<compile_context>
chip_gen: v7x
topology: tpu7x:2x2x1
jax: 0.10.0
libtpu: 0.0.40
codegen_flags: <defaults>
</compile_context>

<pallas_src>
import jax
import jax.numpy as jnp
from jax.experimental import pallas as pl
from jax.experimental.pallas import tpu as pltpu

_LANE = 128                     # vreg lane width
_TILE_BYTES = 2 * 1024 * 1024   # per-buffer tile budget (x + out, each 2x buffered -> ~8 MiB peak)
_MAX_COLS = 2048                # lane-dense output slab width (multiple of 128)


def _round_up(n, m):
    return ((n + m - 1) // m) * m


def _sub_scale_kernel(scale_ref, x_ref, o_ref):
    # scale_ref: SMEM (1,) float32 scalar; x_ref / o_ref: (tm, cols) VMEM tiles.
    s = scale_ref[0]
    o_ref[...] = (x_ref[...].astype(jnp.float32) - s).astype(o_ref.dtype)


def sub_scale(x, scale, *, force_pallas=False):
    """y = x - scale (scalar), same semantics as torch Tensor.sub(scalar)."""
    orig_shape = x.shape
    dtype = x.dtype
    total = x.size
    if total == 0:
        return x

    itemsize = jnp.dtype(dtype).itemsize

    # Tiny inputs: let XLA fuse the subtract instead of paying pallas_call
    # launch + DMA-setup cost (the __main__ test forces the Pallas path).
    if not force_pallas and total * itemsize < (1 << 20):
        return x - jnp.asarray(scale, dtype=jnp.float32).astype(dtype)

    # dtype-aware sublane alignment: f32 -> 8, bf16 -> 16, int8/fp8 -> 32.
    sublane = {4: 8, 2: 16, 1: 32}.get(itemsize, 8)

    # ---- Flatten to a lane-dense 2-D slab [rows, cols] ----------------------
    cols = min(_MAX_COLS, _round_up(total, _LANE))   # multiple of 128
    rows = pl.cdiv(total, cols)

    # Largest sublane-aligned row tile that fits the per-buffer VMEM budget.
    tm = max(sublane, (_TILE_BYTES // (cols * itemsize)) // sublane * sublane)
    tm = min(tm, _round_up(rows, sublane))

    rows_pad = _round_up(rows, tm)                   # ragged tail handled by host padding
    flat = x.reshape(-1)
    pad = rows_pad * cols - total
    if pad:
        flat = jnp.pad(flat, (0, pad))
    x2d = flat.reshape(rows_pad, cols)

    scale_arr = jnp.asarray(scale, dtype=jnp.float32).reshape(1)

    grid = (rows_pad // tm,)
    out2d = pl.pallas_call(
        _sub_scale_kernel,
        out_shape=jax.ShapeDtypeStruct((rows_pad, cols), dtype),
        grid_spec=pltpu.PrefetchScalarGridSpec(
            num_scalar_prefetch=1,                   # scale -> SMEM
            grid=grid,
            in_specs=[pl.BlockSpec((tm, cols), lambda i, s: (i, 0))],
            out_specs=pl.BlockSpec((tm, cols), lambda i, s: (i, 0)),
        ),
        compiler_params=pltpu.CompilerParams(
            dimension_semantics=("parallel",),       # megacore sharding on v7x
        ),
    )(scale_arr, x2d)

    return out2d.reshape(-1)[:total].reshape(orig_shape)


if __name__ == "__main__":
    key = jax.random.PRNGKey(0)

    # Small NCHW input consistent with the op test.
    N, C, H, W = 2, 4, 16, 16
    x = jax.random.normal(key, (N, C, H, W), dtype=jnp.float32)
    scale = 0.5

    z = sub_scale(x, scale, force_pallas=True)       # exercise the Pallas kernel
    jax.block_until_ready(z)

    z_ref = x - scale
    assert z.shape == x.shape
    assert jnp.allclose(z, z_ref, atol=1e-6, rtol=1e-6)

    print("KERNEL_OK")
</pallas_src>

<mosaic_0001>
module attributes {stable_mosaic.version = 11 : i64} {
  func.func @_sub_scale_kernel(%arg0: i32, %arg1: memref<1xf32, #tpu.memory_space<smem>>, %arg2: memref<8x2048xf32, #tpu.memory_space<vmem>>, %arg3: memref<8x2048xf32, #tpu.memory_space<vmem>>) attributes {dimension_semantics = [#tpu.dimension_semantics<parallel>], iteration_bounds = array<i64: 1>, scalar_prefetch = 1 : i64, scratch_operands = 0 : i64, tpu.core_type = #tpu.core_type<tc>, window_params = [{transform_indices = @transform_0, window_bounds = array<i64: 8, 2048>}, {transform_indices = @transform_1, window_bounds = array<i64: 8, 2048>}]} {
    %c0 = arith.constant 0 : index
    %0 = memref.load %arg1[%c0] : memref<1xf32, #tpu.memory_space<smem>>
    %c0_0 = arith.constant 0 : index
    %c0_1 = arith.constant 0 : index
    %1 = vector.load %arg2[%c0_0, %c0_1] : memref<8x2048xf32, #tpu.memory_space<vmem>>, vector<8x2048xf32>
    %2 = vector.broadcast %0 : f32 to vector<8x2048xf32>
    %3 = arith.subf %1, %2 : vector<8x2048xf32>
    %c0_2 = arith.constant 0 : index
    %c0_3 = arith.constant 0 : index
    %4 = vector.load %arg3[%c0_2, %c0_3] : memref<8x2048xf32, #tpu.memory_space<vmem>>, vector<8x2048xf32>
    tpu.vector_store %arg3[%c0_2, %c0_3], %3 {strides = array<i32>} : memref<8x2048xf32, #tpu.memory_space<vmem>>, vector<8x2048xf32>,
    return
  }
  func.func @transform_0(%arg0: i32, %arg1: memref<1xf32, #tpu.memory_space<smem>>) -> (i32, i32) {
    %c0_i32 = arith.constant 0 : i32
    %c0_i32_0 = arith.constant 0 : i32
    return %arg0, %c0_i32 : i32, i32
  }
  func.func @transform_1(%arg0: i32, %arg1: memref<1xf32, #tpu.memory_space<smem>>) -> (i32, i32) {
    %c0_i32 = arith.constant 0 : i32
    %c0_i32_0 = arith.constant 0 : i32
    return %arg0, %c0_i32 : i32, i32
  }
}

</mosaic_0001>

<bundles_post_ra>
// kernel: tpu_custom_call.1
= control target key start
LH: loop header
LB: loop body
LE: loop exit
PB: predicated region body
PF: predicated region fallthrough
CT: control target
= control target key end

     0   :  { %8 = vsyncpa [#allocation5], 0  ;;  %s182_s0 = inlined_call_operand.<no memory space> [shape: f32[1], index: 0, kind: input, shape index: {}]   ;;  %s183_s1 = inlined_call_operand.hbm [shape: f32[8,2048], index: 1, kind: input, shape index: {}]   ;;  %s184_s2 = inlined_call_operand.hbm [shape: f32[8,2048], index: 2, kind: output, shape index: {}]  }
   0x1   :  { %9 = vsyncpa [#allocation6], 0  ;;  %s138_s9 = smov [#allocation4]   ;;  %s90_s13 = scalar_lea.hbm %s183_s1, 2048 }
   0x2   :  { %s16_s10 = sshll.u32 %s138_s9, 4  ;;  %p91_p0 = scmp.ne.s32.totalorder %s183_s1, %s90_s13  ;;  %s17_s10 = int_to_ptr.vmem [resolvable:$true] %s16_s10 }
   0x3   :  { %p94_p1 = scmp.lt.u32.totalorder %s90_s13, %s183_s1 }
   0x5   :  { %p96_p2 = pnand %p94_p1, %p91_p0 }
   0x7   :  { %99 = shalt.err (!%p96_p2)
}
   0x8   :  { %s100_s18 = scalar_lea.vmem %s17_s10, 2048  ;;  %p105_p4 = scmp.lt.s32.totalorder %s17_s10, %s17_s10 }
   0x9   :  { %p101_p3 = scmp.ne.s32.totalorder %s17_s10, %s100_s18  ;;  %p106_p5 = scmp.lt.s32.totalorder %s100_s18, %s100_s18 }
   0xb   :  { %p107_p6 = por %p106_p5, %p105_p4 }
   0xd   :  { %p108_p7 = pnand %p107_p6, %p101_p3 }
   0xf   :  { %111 = shalt.err (!%p108_p7)
}
  0x10   :  { %19 = dma.hbm_to_vmem [thread:$0]  %s183_s1, 2048, %s17_s10, [#allocation5]  }
  0x11   :  { %134 = dma.done.wait [#allocation5], 2048  }
  0x12   :  { %135 = vsyncadd [#allocation5], 4294965248  ;;  %v40_v0 = vstv %s182_s0  ;;  %v24_v1 = vld [vmem:[#allocation4] sm:$0xff]  ;;  %v25_v2 = vld [vmem:[#allocation4 + $0x8] sm:$0xff]  ;;  %s139_s0 = smov [#allocation7]  }
  0x13   :  { %v26_v3 = vld [vmem:[#allocation4 + $0x10] sm:$0xff]  ;;  %v41_v4 = vsub.f32 %v24_v1, %v40_v0  ;;  %v42_v5 = vsub.f32 %v25_v2, %v40_v0  ;;  %v27_v7 = vld [vmem:[#allocation4 + $0x18] sm:$0xff]  ;;  %v28_v8 = vld [vmem:[#allocation4 + $0x20] sm:$0xff]  ;;  %s79_s1 = sshll.u32 %s139_s0, 4  ;;  %s80_s1 = int_to_ptr.vmem [resolvable:$true] %s79_s1 }
  0x14   :  { %v43_v6 = vsub.f32 %v26_v3, %v40_v0  ;;  %v29_v9 = vld [vmem:[#allocation4 + $0x28] sm:$0xff]  ;;  %v44_v10 = vsub.f32 %v27_v7, %v40_v0  ;;  %v45_v11 = vsub.f32 %v28_v8, %v40_v0  ;;  %v30_v13 = vld [vmem:[#allocation4 + $0x30] sm:$0xff]  ;;  %v31_v14 = vld [vmem:[#allocation4 + $0x38] sm:$0xff]  ;;  %s112_s23 = scalar_lea.vmem %s80_s1, 2048  ;;  %p117_p9 = scmp.lt.s32.totalorder %s80_s1, %s80_s1 }
  0x15   :  { %v46_v12 = vsub.f32 %v29_v9, %v40_v0  ;;  %v32_v15 = vld [vmem:[#allocation4 + $0x40] sm:$0xff]  ;;  %57 = vst [vmem:[#allocation7] sm:$0xff] %v41_v4  ;;  %58 = vst [vmem:[#allocation7 + $0x8] sm:$0xff] %v42_v5  ;;  %v47_v16 = vsub.f32 %v30_v13, %v40_v0  ;;  %v48_v17 = vsub.f32 %v31_v14, %v40_v0  ;;  %v33_v19 = vld [vmem:[#allocation4 + $0x48] sm:$0xff]  ;;  %p113_p8 = scmp.ne.s32.totalorder %s80_s1, %s112_s23  ;;  %p118_p10 = scmp.lt.s32.totalorder %s112_s23, %s112_s23 }
  0x16   :  { %59 = vst [vmem:[#allocation7 + $0x10] sm:$0xff] %v43_v6  ;;  %v49_v18 = vsub.f32 %v32_v15, %v40_v0  ;;  %v34_v20 = vld [vmem:[#allocation4 + $0x50] sm:$0xff]  ;;  %v35_v21 = vld [vmem:[#allocation4 + $0x58] sm:$0xff]  ;;  %60 = vst [vmem:[#allocation7 + $0x18] sm:$0xff] %v44_v10  ;;  %v50_v22 = vsub.f32 %v33_v19, %v40_v0 }
  0x17   :  { %61 = vst [vmem:[#allocation7 + $0x20] sm:$0xff] %v45_v11  ;;  %62 = vst [vmem:[#allocation7 + $0x28] sm:$0xff] %v46_v12  ;;  %v51_v23 = vsub.f32 %v34_v20, %v40_v0  ;;  %v52_v24 = vsub.f32 %v35_v21, %v40_v0  ;;  %v36_v25 = vld [vmem:[#allocation4 + $0x60] sm:$0xff]  ;;  %v37_v26 = vld [vmem:[#allocation4 + $0x68] sm:$0xff]  ;;  %p119_p11 = por %p118_p10, %p117_p9 }
  0x18   :  { %v38_v27 = vld [vmem:[#allocation4 + $0x70] sm:$0xff]  ;;  %63 = vst [vmem:[#allocation7 + $0x30] sm:$0xff] %v47_v16  ;;  %64 = vst [vmem:[#allocation7 + $0x38] sm:$0xff] %v48_v17  ;;  %v53_v28 = vsub.f32 %v36_v25, %v40_v0  ;;  %v54_v29 = vsub.f32 %v37_v26, %v40_v0  ;;  %v39_v31 = vld [vmem:[#allocation4 + $0x78] sm:$0xff] }
  0x19   :  { %65 = vst [vmem:[#allocation7 + $0x40] sm:$0xff] %v49_v18  ;;  %v55_v30 = vsub.f32 %v38_v27, %v40_v0  ;;  %66 = vst [vmem:[#allocation7 + $0x48] sm:$0xff] %v50_v22  ;;  %v56_v32 = vsub.f32 %v39_v31, %v40_v0  ;;  %p120_p12 = pnand %p119_p11, %p113_p8 }
  0x1a   :  { %67 = vst [vmem:[#allocation7 + $0x50] sm:$0xff] %v51_v23  ;;  %68 = vst [vmem:[#allocation7 + $0x58] sm:$0xff] %v52_v24 }
  0x1b   :  { %69 = vst [vmem:[#allocation7 + $0x60] sm:$0xff] %v53_v28  ;;  %70 = vst [vmem:[#allocation7 + $0x68] sm:$0xff] %v54_v29 }
  0x1c   :  { %71 = vst [vmem:[#allocation7 + $0x70] sm:$0xff] %v55_v30  ;;  %72 = vst [vmem:[#allocation7 + $0x78] sm:$0xff] %v56_v32 }
  0x1d   :  { %123 = shalt.err (!%p120_p12)
}
  0x1e   :  { %s124_s26 = scalar_lea.hbm %s184_s2, 2048 }
  0x1f   :  { %p125_p13 = scmp.ne.s32.totalorder %s184_s2, %s124_s26  ;;  %p128_p0 = scmp.lt.u32.totalorder %s124_s26, %s184_s2 }
  0x21   :  { %p130_p1 = pnand %p128_p0, %p125_p13 }
  0x23   :  { %133 = shalt.err (!%p130_p1)
}
  0x24   :  { %82 = dma.vmem_to_hbm [thread:$0]  %s80_s1, 2048, %s184_s2, [#allocation6]  }
  0x25   :  { %136 = dma.done.wait [#allocation6], 2048  }
  0x26   :  { %137 = vsyncadd [#allocation6], 4294965248 }
  0x27   :  { %86 = vsyncpa [#allocation5], 1 }
  0x28   :  { %87 = vsyncpa [#allocation6], 1 }

</bundles_post_ra>
